<compile_context>
chip_gen: v7x
topology: tpu7x:2x2x1
jax: 0.10.0
libtpu: 0.0.40
codegen_flags: <defaults>
</compile_context>

<pallas_src>
import functools
import math

import jax
import jax.numpy as jnp
from jax import lax
from jax.experimental import pallas as pl
from jax.experimental.pallas import tpu as pltpu


# Contract last dim of lhs with last dim of rhs (== x @ W.T, no transpose op).
_DN_LAST = (((1,), (1,)), ((), ()))
_MASK_VALUE = -1e30  # finite causal-mask bias (NaN-safe vs -inf)


# --------------------------------------------------------------------------
# Fused LSA kernel: one (Bt, T, C) slab of batch rows per grid step
# --------------------------------------------------------------------------

def _lsa_fused_kernel(x_ref, wqkv_ref, bqkv_ref, w1_ref, b1_ref,
                      w2_ref, b2_ref, wproj_ref, bproj_ref, o_ref,
                      *, n_head):
    bt, t, c = x_ref.shape
    hs = c // n_head
    m = bt * t                 # flattened (batch, token) rows  -> MXU M dim
    g = n_head * bt            # flattened (head, batch) attention batch dim
    scale = 1.0 / math.sqrt(hs)
    bf16 = jnp.bfloat16

    # ---- load + in-kernel cast (hidden under the matmuls) ------------------
    x2d = x_ref[...].reshape(m, c).astype(bf16)                    # (M, C)

    # ---- c_attn: qkv = x @ Wqkv.T + b  -> (M, 3C), f32 accumulation --------
    qkv = lax.dot_general(x2d, wqkv_ref[...], _DN_LAST,
                          preferred_element_type=jnp.float32) + bqkv_ref[...]
    q = qkv[:, :c] * scale        # fold 1/sqrt(hs) into q (f32, pre-cast)
    k = qkv[:, c:2 * c]
    v = qkv[:, 2 * c:]

    # ---- ONE relayout into the heads-batched layout (G, T, hs) -------------
    # Built from hs-wide lane slices + leading-axis concat + leading-dim
    # reshapes only (all Mosaic-safe); g = h * bt + b.
    def to_heads(mat2d):
        pieces = [mat2d[:, h * hs:(h + 1) * hs].reshape(bt, t, hs)
                  for h in range(n_head)]
        return jnp.concatenate(pieces, axis=0)                     # (G, T, hs)

    q_h = to_heads(q).astype(bf16)
    k_h = to_heads(k).astype(bf16)
    v_h = to_heads(v)                                              # f32

    # ---- gated value transform: shared (hs, hs) weights, all heads/tokens --
    v2 = v_h.reshape(g * t, hs)                                    # (G*T, hs)
    v2_bf = v2.astype(bf16)
    l1 = lax.dot_general(v2_bf, w1_ref[...], _DN_LAST,
                         preferred_element_type=jnp.float32) + b1_ref[...]
    l2 = lax.dot_general(v2_bf, w2_ref[...], _DN_LAST,
                         preferred_element_type=jnp.float32) + b2_ref[...]
    v_mod = ((v2 + l1) * jax.nn.sigmoid(l2)).astype(bf16).reshape(g, t, hs)

    # ---- causal attention: ONE batched dot for scores, ONE for att@V -------
    s = jnp.einsum('gqd,gkd->gqk', q_h, k_h,
                   preferred_element_type=jnp.float32)             # (G, T, T)
    rows = lax.broadcasted_iota(jnp.int32, (t, t), 0)
    cols = lax.broadcasted_iota(jnp.int32, (t, t), 1)
    s = jnp.where((rows >= cols)[None, :, :], s, _MASK_VALUE)
    s = s - jnp.max(s, axis=-1, keepdims=True)
    p = jnp.exp(s)
    # EUP reciprocal (approx=True): ~1e-3 rel error, fine for inference-style
    # use; flip to approx=False for training-sensitive paths.
    p = p * pl.reciprocal(jnp.sum(p, axis=-1, keepdims=True), approx=True)
    y = jnp.einsum('gqk,gkd->gqd', p.astype(bf16), v_mod,
                   preferred_element_type=jnp.float32)             # (G, T, hs)

    # ---- merge heads back to the lane-dense (M, C) layout -------------------
    y2d = jnp.concatenate(
        [y[h * bt:(h + 1) * bt].reshape(m, hs) for h in range(n_head)],
        axis=-1).astype(bf16)                                      # (M, C)

    # ---- c_proj --------------------------------------------------------------
    out = lax.dot_general(y2d, wproj_ref[...], _DN_LAST,
                          preferred_element_type=jnp.float32) + bproj_ref[...]
    o_ref[...] = out.reshape(bt, t, c).astype(o_ref.dtype)


# --------------------------------------------------------------------------
# One-time parameter preparation (parameter-init time, not per forward call)
# --------------------------------------------------------------------------

def prepare_lsa_params(params):
    bf16 = jnp.bfloat16
    f32 = jnp.float32
    return {
        "wqkv": params["c_attn_w"].astype(bf16),            # (3C, C)
        "bqkv": params["c_attn_b"].reshape(1, -1).astype(f32),
        "w1": params["l1_w"].astype(bf16),                  # (hs, hs)
        "b1": params["l1_b"].reshape(1, -1).astype(f32),
        "w2": params["l2_w"].astype(bf16),                  # (hs, hs)
        "b2": params["l2_b"].reshape(1, -1).astype(f32),
        "wproj": params["c_proj_w"].astype(bf16),           # (C, C)
        "bproj": params["c_proj_b"].reshape(1, -1).astype(f32),
    }


def _pick_block_batch(batch, seq, target_rows=128):
    """Largest divisor of `batch` whose row count (Bt*T) targets >=128 M dim."""
    want = max(1, -(-target_rows // seq))     # ceil(target_rows / seq)
    best = 1
    for cand in range(1, batch + 1):
        if batch % cand == 0 and cand <= want:
            best = cand
    return best


# --------------------------------------------------------------------------
# Wrapper: pallas_call
# --------------------------------------------------------------------------

def lsa_forward(x, prep, n_head):
    B, T, C = x.shape
    hs = C // n_head
    bt = _pick_block_batch(B, T)
    grid = (B // bt,)

    x_spec = pl.BlockSpec((bt, T, C), lambda i: (i, 0, 0))
    wqkv_spec = pl.BlockSpec((3 * C, C), lambda i: (0, 0))
    bqkv_spec = pl.BlockSpec((1, 3 * C), lambda i: (0, 0))
    whh_spec = pl.BlockSpec((hs, hs), lambda i: (0, 0))
    bh_spec = pl.BlockSpec((1, hs), lambda i: (0, 0))
    wcc_spec = pl.BlockSpec((C, C), lambda i: (0, 0))
    bc_spec = pl.BlockSpec((1, C), lambda i: (0, 0))
    out_spec = pl.BlockSpec((bt, T, C), lambda i: (i, 0, 0))

    # Advisory cost estimate (actual executed FLOPs, not inflated).
    flops = int(
        2 * B * T * C * 3 * C                 # c_attn
        + 2 * 2 * B * T * n_head * hs * hs    # l1 + l2 (shared (hs,hs) weights)
        + 2 * 2 * B * n_head * T * T * hs     # q@k^T and att@v
        + 2 * B * T * C * C                   # c_proj
    )
    transcendentals = int(B * n_head * T * T + B * T * C)
    bytes_accessed = int(
        2 * B * T * C * 4                                           # x in + out (f32)
        + (3 * C * C + C * C + 2 * hs * hs) * 2                     # bf16 weights
        + (3 * C + C + 2 * hs) * 4                                  # f32 biases
    )

    kernel = functools.partial(_lsa_fused_kernel, n_head=n_head)

    return pl.pallas_call(
        kernel,
        out_shape=jax.ShapeDtypeStruct((B, T, C), jnp.float32),
        grid=grid,
        in_specs=[x_spec, wqkv_spec, bqkv_spec, whh_spec, bh_spec,
                  whh_spec, bh_spec, wcc_spec, bc_spec],
        out_specs=out_spec,
        compiler_params=pltpu.CompilerParams(
            dimension_semantics=("parallel",),
            # Ample for this tile footprint (<1 MiB); re-derive when scaling
            # T/C (<=64 MiB on v7x, up to ~128 MiB usable on v5e/v6e).
            vmem_limit_bytes=32 * 1024 * 1024),
        cost_estimate=pl.CostEstimate(
            flops=flops, transcendentals=transcendentals,
            bytes_accessed=bytes_accessed),
    )(x, prep["wqkv"], prep["bqkv"], prep["w1"], prep["b1"],
      prep["w2"], prep["b2"], prep["wproj"], prep["bproj"])


# --------------------------------------------------------------------------
# Pure-JAX f32 reference (mirrors the PyTorch forward) for correctness check
# --------------------------------------------------------------------------

def lsa_reference(x, params, n_head):
    B, T, C = x.shape
    hs = C // n_head
    qkv = x @ params["c_attn_w"].T + params["c_attn_b"]
    q, k, v = jnp.split(qkv, 3, axis=2)
    q = q.reshape(B, T, n_head, hs).transpose(0, 2, 1, 3)
    k = k.reshape(B, T, n_head, hs).transpose(0, 2, 1, 3)
    v = v.reshape(B, T, n_head, hs).transpose(0, 2, 1, 3)
    att = (q @ jnp.swapaxes(k, -2, -1)) * (1.0 / math.sqrt(hs))
    mask = jnp.tril(jnp.ones((T, T), dtype=bool))
    att = jnp.where(mask[None, None], att, -jnp.inf)
    att = jax.nn.softmax(att, axis=-1)
    l1 = v @ params["l1_w"].T + params["l1_b"]
    l2 = jax.nn.sigmoid(v @ params["l2_w"].T + params["l2_b"])
    v = (v + l1) * l2
    y = att @ v
    y = y.transpose(0, 2, 1, 3).reshape(B, T, C)
    return y @ params["c_proj_w"].T + params["c_proj_b"]


# --------------------------------------------------------------------------
# Main
# --------------------------------------------------------------------------

if __name__ == "__main__":
    # config: n_embd=32, n_head=4, block_size>=T; run with B=2, T=8
    B, T, C, n_head = 2, 8, 32, 4
    hs = C // n_head

    key = jax.random.PRNGKey(0)
    keys = jax.random.split(key, 9)

    params = {
        "c_attn_w": jax.random.normal(keys[0], (3 * C, C), jnp.float32) * 0.02,
        "c_attn_b": jax.random.normal(keys[1], (3 * C,), jnp.float32) * 0.02,
        "c_proj_w": jax.random.normal(keys[2], (C, C), jnp.float32) * 0.02,
        "c_proj_b": jax.random.normal(keys[3], (C,), jnp.float32) * 0.02,
        "l1_w": jax.random.normal(keys[4], (hs, hs), jnp.float32) * 0.02,
        "l1_b": jax.random.normal(keys[5], (hs,), jnp.float32) * 0.02,
        "l2_w": jax.random.normal(keys[6], (hs, hs), jnp.float32) * 0.02,
        "l2_b": jax.random.normal(keys[7], (hs,), jnp.float32) * 0.02,
    }

    x = jax.random.normal(keys[8], (B, T, C), jnp.float32)

    # One-time weight prep (bf16 casts, 2-D biases) outside the forward.
    prep = prepare_lsa_params(params)

    out = lsa_forward(x, prep, n_head)
    out = jax.block_until_ready(out)

    ref = lsa_reference(x, params, n_head)
    assert out.shape == (B, T, C)
    # bf16 MXU operands (f32 accumulation) -> relaxed tolerance vs f32 reference
    assert jnp.allclose(out, ref, atol=2e-3, rtol=2e-2), "mismatch vs reference"

    print("KERNEL_OK")
</pallas_src>

<mosaic_0001>
module attributes {stable_mosaic.version = 11 : i64} {
  func.func @_lsa_fused_kernel(%arg0: i32, %arg1: memref<2x8x32xf32, #tpu.memory_space<vmem>>, %arg2: memref<96x32xbf16, #tpu.memory_space<vmem>>, %arg3: memref<1x96xf32, #tpu.memory_space<vmem>>, %arg4: memref<8x8xbf16, #tpu.memory_space<vmem>>, %arg5: memref<1x8xf32, #tpu.memory_space<vmem>>, %arg6: memref<8x8xbf16, #tpu.memory_space<vmem>>, %arg7: memref<1x8xf32, #tpu.memory_space<vmem>>, %arg8: memref<32x32xbf16, #tpu.memory_space<vmem>>, %arg9: memref<1x32xf32, #tpu.memory_space<vmem>>, %arg10: memref<2x8x32xf32, #tpu.memory_space<vmem>>) attributes {dimension_semantics = [#tpu.dimension_semantics<parallel>], iteration_bounds = array<i64: 1>, scalar_prefetch = 0 : i64, scratch_operands = 0 : i64, tpu.core_type = #tpu.core_type<tc>, window_params = [{transform_indices = @transform_0, window_bounds = array<i64: 2, 8, 32>}, {pipeline_mode = #tpu.pipeline_mode<synchronous>, transform_indices = @transform_1, window_bounds = array<i64: 96, 32>}, {pipeline_mode = #tpu.pipeline_mode<synchronous>, transform_indices = @transform_2, window_bounds = array<i64: 1, 96>}, {pipeline_mode = #tpu.pipeline_mode<synchronous>, transform_indices = @transform_3, window_bounds = array<i64: 8, 8>}, {pipeline_mode = #tpu.pipeline_mode<synchronous>, transform_indices = @transform_4, window_bounds = array<i64: 1, 8>}, {pipeline_mode = #tpu.pipeline_mode<synchronous>, transform_indices = @transform_5, window_bounds = array<i64: 8, 8>}, {pipeline_mode = #tpu.pipeline_mode<synchronous>, transform_indices = @transform_6, window_bounds = array<i64: 1, 8>}, {pipeline_mode = #tpu.pipeline_mode<synchronous>, transform_indices = @transform_7, window_bounds = array<i64: 32, 32>}, {pipeline_mode = #tpu.pipeline_mode<synchronous>, transform_indices = @transform_8, window_bounds = array<i64: 1, 32>}, {transform_indices = @transform_9, window_bounds = array<i64: 2, 8, 32>}]} {
    %c0 = arith.constant 0 : index
    %c0_0 = arith.constant 0 : index
    %c0_1 = arith.constant 0 : index
    %0 = vector.load %arg1[%c0, %c0_0, %c0_1] : memref<2x8x32xf32, #tpu.memory_space<vmem>>, vector<2x8x32xf32>
    %1 = vector.shape_cast %0 : vector<2x8x32xf32> to vector<16x32xf32>
    %2 = arith.truncf %1 : vector<16x32xf32> to vector<16x32xbf16>
    %c0_2 = arith.constant 0 : index
    %c0_3 = arith.constant 0 : index
    %3 = vector.load %arg2[%c0_2, %c0_3] : memref<96x32xbf16, #tpu.memory_space<vmem>>, vector<96x32xbf16>
    %cst = arith.constant dense<0.000000e+00> : vector<16x96xf32>
    %4 = tpu.matmul %2, %3, %cst {dimension_numbers = #tpu.dot_dimension_numbers<[1], [1], [0], [0], [0, 0, 1, 0], [], []>} : vector<16x32xbf16>, vector<96x32xbf16>, vector<16x96xf32> -> vector<16x96xf32>
    %c0_4 = arith.constant 0 : index
    %c0_5 = arith.constant 0 : index
    %5 = vector.load %arg3[%c0_4, %c0_5] : memref<1x96xf32, #tpu.memory_space<vmem>>, vector<1x96xf32>
    %6 = vector.broadcast %5 : vector<1x96xf32> to vector<16x96xf32>
    %7 = arith.addf %4, %6 : vector<16x96xf32>
    %8 = vector.extract_strided_slice %7 {offsets = [0, 0], sizes = [16, 32], strides = [1, 1]} : vector<16x96xf32> to vector<16x32xf32>
    %cst_6 = arith.constant 0.353553385 : f32
    %9 = vector.broadcast %cst_6 : f32 to vector<16x32xf32>
    %10 = arith.mulf %8, %9 : vector<16x32xf32>
    %11 = vector.extract_strided_slice %7 {offsets = [0, 32], sizes = [16, 32], strides = [1, 1]} : vector<16x96xf32> to vector<16x32xf32>
    %12 = vector.extract_strided_slice %7 {offsets = [0, 64], sizes = [16, 32], strides = [1, 1]} : vector<16x96xf32> to vector<16x32xf32>
    %13 = vector.extract_strided_slice %10 {offsets = [0, 0], sizes = [16, 8], strides = [1, 1]} : vector<16x32xf32> to vector<16x8xf32>
    %14 = vector.shape_cast %13 : vector<16x8xf32> to vector<2x8x8xf32>
    %15 = vector.extract_strided_slice %10 {offsets = [0, 8], sizes = [16, 8], strides = [1, 1]} : vector<16x32xf32> to vector<16x8xf32>
    %16 = vector.shape_cast %15 : vector<16x8xf32> to vector<2x8x8xf32>
    %17 = vector.extract_strided_slice %10 {offsets = [0, 16], sizes = [16, 8], strides = [1, 1]} : vector<16x32xf32> to vector<16x8xf32>
    %18 = vector.shape_cast %17 : vector<16x8xf32> to vector<2x8x8xf32>
    %19 = vector.extract_strided_slice %10 {offsets = [0, 24], sizes = [16, 8], strides = [1, 1]} : vector<16x32xf32> to vector<16x8xf32>
    %20 = vector.shape_cast %19 : vector<16x8xf32> to vector<2x8x8xf32>
    %21 = tpu.concatenate %14, %16, %18, %20 in 0 : vector<2x8x8xf32>, vector<2x8x8xf32>, vector<2x8x8xf32>, vector<2x8x8xf32> -> vector<8x8x8xf32>
    %22 = arith.truncf %21 : vector<8x8x8xf32> to vector<8x8x8xbf16>
    %23 = vector.extract_strided_slice %11 {offsets = [0, 0], sizes = [16, 8], strides = [1, 1]} : vector<16x32xf32> to vector<16x8xf32>
    %24 = vector.shape_cast %23 : vector<16x8xf32> to vector<2x8x8xf32>
    %25 = vector.extract_strided_slice %11 {offsets = [0, 8], sizes = [16, 8], strides = [1, 1]} : vector<16x32xf32> to vector<16x8xf32>
    %26 = vector.shape_cast %25 : vector<16x8xf32> to vector<2x8x8xf32>
    %27 = vector.extract_strided_slice %11 {offsets = [0, 16], sizes = [16, 8], strides = [1, 1]} : vector<16x32xf32> to vector<16x8xf32>
    %28 = vector.shape_cast %27 : vector<16x8xf32> to vector<2x8x8xf32>
    %29 = vector.extract_strided_slice %11 {offsets = [0, 24], sizes = [16, 8], strides = [1, 1]} : vector<16x32xf32> to vector<16x8xf32>
    %30 = vector.shape_cast %29 : vector<16x8xf32> to vector<2x8x8xf32>
    %31 = tpu.concatenate %24, %26, %28, %30 in 0 : vector<2x8x8xf32>, vector<2x8x8xf32>, vector<2x8x8xf32>, vector<2x8x8xf32> -> vector<8x8x8xf32>
    %32 = arith.truncf %31 : vector<8x8x8xf32> to vector<8x8x8xbf16>
    %33 = vector.extract_strided_slice %12 {offsets = [0, 0], sizes = [16, 8], strides = [1, 1]} : vector<16x32xf32> to vector<16x8xf32>
    %34 = vector.shape_cast %33 : vector<16x8xf32> to vector<2x8x8xf32>
    %35 = vector.extract_strided_slice %12 {offsets = [0, 8], sizes = [16, 8], strides = [1, 1]} : vector<16x32xf32> to vector<16x8xf32>
    %36 = vector.shape_cast %35 : vector<16x8xf32> to vector<2x8x8xf32>
    %37 = vector.extract_strided_slice %12 {offsets = [0, 16], sizes = [16, 8], strides = [1, 1]} : vector<16x32xf32> to vector<16x8xf32>
    %38 = vector.shape_cast %37 : vector<16x8xf32> to vector<2x8x8xf32>
    %39 = vector.extract_strided_slice %12 {offsets = [0, 24], sizes = [16, 8], strides = [1, 1]} : vector<16x32xf32> to vector<16x8xf32>
    %40 = vector.shape_cast %39 : vector<16x8xf32> to vector<2x8x8xf32>
    %41 = tpu.concatenate %34, %36, %38, %40 in 0 : vector<2x8x8xf32>, vector<2x8x8xf32>, vector<2x8x8xf32>, vector<2x8x8xf32> -> vector<8x8x8xf32>
    %42 = vector.shape_cast %41 : vector<8x8x8xf32> to vector<64x8xf32>
    %43 = arith.truncf %42 : vector<64x8xf32> to vector<64x8xbf16>
    %c0_7 = arith.constant 0 : index
    %c0_8 = arith.constant 0 : index
    %44 = vector.load %arg4[%c0_7, %c0_8] : memref<8x8xbf16, #tpu.memory_space<vmem>>, vector<8x8xbf16>
    %cst_9 = arith.constant dense<0.000000e+00> : vector<64x8xf32>
    %45 = tpu.matmul %43, %44, %cst_9 {dimension_numbers = #tpu.dot_dimension_numbers<[1], [1], [0], [0], [0, 0, 1, 0], [], []>} : vector<64x8xbf16>, vector<8x8xbf16>, vector<64x8xf32> -> vector<64x8xf32>
    %c0_10 = arith.constant 0 : index
    %c0_11 = arith.constant 0 : index
    %46 = vector.load %arg5[%c0_10, %c0_11] : memref<1x8xf32, #tpu.memory_space<vmem>>, vector<1x8xf32>
    %47 = vector.broadcast %46 : vector<1x8xf32> to vector<64x8xf32>
    %48 = arith.addf %45, %47 : vector<64x8xf32>
    %c0_12 = arith.constant 0 : index
    %c0_13 = arith.constant 0 : index
    %49 = vector.load %arg6[%c0_12, %c0_13] : memref<8x8xbf16, #tpu.memory_space<vmem>>, vector<8x8xbf16>
    %cst_14 = arith.constant dense<0.000000e+00> : vector<64x8xf32>
    %50 = tpu.matmul %43, %49, %cst_14 {dimension_numbers = #tpu.dot_dimension_numbers<[1], [1], [0], [0], [0, 0, 1, 0], [], []>} : vector<64x8xbf16>, vector<8x8xbf16>, vector<64x8xf32> -> vector<64x8xf32>
    %c0_15 = arith.constant 0 : index
    %c0_16 = arith.constant 0 : index
    %51 = vector.load %arg7[%c0_15, %c0_16] : memref<1x8xf32, #tpu.memory_space<vmem>>, vector<1x8xf32>
    %52 = vector.broadcast %51 : vector<1x8xf32> to vector<64x8xf32>
    %53 = arith.addf %50, %52 : vector<64x8xf32>
    %54 = arith.addf %42, %48 : vector<64x8xf32>
    %55 = arith.negf %53 : vector<64x8xf32>
    %56 = math.exp %55 : vector<64x8xf32>
    %cst_17 = arith.constant 1.000000e+00 : f32
    %57 = vector.broadcast %cst_17 : f32 to vector<64x8xf32>
    %58 = arith.addf %57, %56 : vector<64x8xf32>
    %59 = arith.divf %57, %58 : vector<64x8xf32>
    %60 = arith.mulf %54, %59 : vector<64x8xf32>
    %61 = arith.truncf %60 : vector<64x8xf32> to vector<64x8xbf16>
    %62 = vector.shape_cast %61 : vector<64x8xbf16> to vector<8x8x8xbf16>
    "tpu.trace_start"() <{level = 10 : i32, message = "gqd,gkd->gqk"}> : () -> ()
    %cst_18 = arith.constant dense<0.000000e+00> : vector<8x8x8xf32>
    %63 = tpu.matmul %22, %32, %cst_18 {dimension_numbers = #tpu.dot_dimension_numbers<[2], [2], [1], [1], [0, 0, 0, 1, 1, 1], [0], [0]>} : vector<8x8x8xbf16>, vector<8x8x8xbf16>, vector<8x8x8xf32> -> vector<8x8x8xf32>
    "tpu.trace_stop"() : () -> ()
    %64 = tpu.iota {dimensions = array<i32: 0>} : vector<8x8xi32>
    %65 = tpu.iota {dimensions = array<i32: 1>} : vector<8x8xi32>
    %66 = arith.cmpi sge, %64, %65 : vector<8x8xi32>
    %67 = vector.shape_cast %66 : vector<8x8xi1> to vector<1x8x8xi1>
    %cst_19 = arith.constant -1.000000e+30 : f32
    %68 = vector.shape_cast %67 : vector<1x8x8xi1> to vector<1x8x8xi1>
    %69 = vector.broadcast %68 : vector<1x8x8xi1> to vector<8x8x8xi1>
    %70 = vector.broadcast %cst_19 : f32 to vector<8x8x8xf32>
    %71 = arith.select %69, %63, %70 : vector<8x8x8xi1>, vector<8x8x8xf32>
    %cst_20 = arith.constant dense<0xFF800000> : vector<8x8xf32>
    %72 = vector.multi_reduction <maximumf>, %71, %cst_20 [2] : vector<8x8x8xf32> to vector<8x8xf32>
    %73 = vector.shape_cast %72 : vector<8x8xf32> to vector<8x8x1xf32>
    %74 = vector.broadcast %73 : vector<8x8x1xf32> to vector<8x8x8xf32>
    %75 = arith.subf %71, %74 : vector<8x8x8xf32>
    %76 = math.exp %75 : vector<8x8x8xf32>
    %cst_21 = arith.constant dense<0.000000e+00> : vector<8x8xf32>
    %77 = vector.multi_reduction <add>, %76, %cst_21 [2] : vector<8x8x8xf32> to vector<8x8xf32>
    %78 = vector.shape_cast %77 : vector<8x8xf32> to vector<8x8x1xf32>
    %79 = tpu.reciprocal %78 {approx = true} : vector<8x8x1xf32> -> vector<8x8x1xf32>
    %80 = vector.broadcast %79 : vector<8x8x1xf32> to vector<8x8x8xf32>
    %81 = arith.mulf %76, %80 : vector<8x8x8xf32>
    %82 = arith.truncf %81 : vector<8x8x8xf32> to vector<8x8x8xbf16>
    "tpu.trace_start"() <{level = 10 : i32, message = "gqk,gkd->gqd"}> : () -> ()
    %cst_22 = arith.constant dense<0.000000e+00> : vector<8x8x8xf32>
    %83 = tpu.matmul %82, %62, %cst_22 {dimension_numbers = #tpu.dot_dimension_numbers<[2], [1], [1], [2], [0, 0, 0, 1, 1, 2], [0], [0]>} : vector<8x8x8xbf16>, vector<8x8x8xbf16>, vector<8x8x8xf32> -> vector<8x8x8xf32>
    "tpu.trace_stop"() : () -> ()
    %84 = vector.extract_strided_slice %83 {offsets = [0, 0, 0], sizes = [2, 8, 8], strides = [1, 1, 1]} : vector<8x8x8xf32> to vector<2x8x8xf32>
    %85 = vector.shape_cast %84 : vector<2x8x8xf32> to vector<16x8xf32>
    %86 = vector.extract_strided_slice %83 {offsets = [2, 0, 0], sizes = [2, 8, 8], strides = [1, 1, 1]} : vector<8x8x8xf32> to vector<2x8x8xf32>
    %87 = vector.shape_cast %86 : vector<2x8x8xf32> to vector<16x8xf32>
    %88 = vector.extract_strided_slice %83 {offsets = [4, 0, 0], sizes = [2, 8, 8], strides = [1, 1, 1]} : vector<8x8x8xf32> to vector<2x8x8xf32>
    %89 = vector.shape_cast %88 : vector<2x8x8xf32> to vector<16x8xf32>
    %90 = vector.extract_strided_slice %83 {offsets = [6, 0, 0], sizes = [2, 8, 8], strides = [1, 1, 1]} : vector<8x8x8xf32> to vector<2x8x8xf32>
    %91 = vector.shape_cast %90 : vector<2x8x8xf32> to vector<16x8xf32>
    %92 = tpu.concatenate %85, %87, %89, %91 in 1 : vector<16x8xf32>, vector<16x8xf32>, vector<16x8xf32>, vector<16x8xf32> -> vector<16x32xf32>
    %93 = arith.truncf %92 : vector<16x32xf32> to vector<16x32xbf16>
    %c0_23 = arith.constant 0 : index
    %c0_24 = arith.constant 0 : index
    %94 = vector.load %arg8[%c0_23, %c0_24] : memref<32x32xbf16, #tpu.memory_space<vmem>>, vector<32x32xbf16>
    %cst_25 = arith.constant dense<0.000000e+00> : vector<16x32xf32>
    %95 = tpu.matmul %93, %94, %cst_25 {dimension_numbers = #tpu.dot_dimension_numbers<[1], [1], [0], [0], [0, 0, 1, 0], [], []>} : vector<16x32xbf16>, vector<32x32xbf16>, vector<16x32xf32> -> vector<16x32xf32>
    %c0_26 = arith.constant 0 : index
    %c0_27 = arith.constant 0 : index
    %96 = vector.load %arg9[%c0_26, %c0_27] : memref<1x32xf32, #tpu.memory_space<vmem>>, vector<1x32xf32>
    %97 = vector.broadcast %96 : vector<1x32xf32> to vector<16x32xf32>
    %98 = arith.addf %95, %97 : vector<16x32xf32>
    %99 = vector.shape_cast %98 : vector<16x32xf32> to vector<2x8x32xf32>
    %c0_28 = arith.constant 0 : index
    %c0_29 = arith.constant 0 : index
    %c0_30 = arith.constant 0 : index
    %100 = vector.load %arg10[%c0_28, %c0_29, %c0_30] : memref<2x8x32xf32, #tpu.memory_space<vmem>>, vector<2x8x32xf32>
    tpu.vector_store %arg10[%c0_28, %c0_29, %c0_30], %99 {strides = array<i32>} : memref<2x8x32xf32, #tpu.memory_space<vmem>>, vector<2x8x32xf32>,
    return
  }
  func.func @transform_0(%arg0: i32) -> (i32, i32, i32) {
    %c0_i32 = arith.constant 0 : i32
    %c0_i32_0 = arith.constant 0 : i32
    %c0_i32_1 = arith.constant 0 : i32
    return %arg0, %c0_i32, %c0_i32_0 : i32, i32, i32
  }
  func.func @transform_1(%arg0: i32) -> (i32, i32) {
    %c0_i32 = arith.constant 0 : i32
    %c0_i32_0 = arith.constant 0 : i32
    %c0_i32_1 = arith.constant 0 : i32
    return %c0_i32, %c0_i32_0 : i32, i32
  }
  func.func @transform_2(%arg0: i32) -> (i32, i32) {
    %c0_i32 = arith.constant 0 : i32
    %c0_i32_0 = arith.constant 0 : i32
    %c0_i32_1 = arith.constant 0 : i32
    return %c0_i32, %c0_i32_0 : i32, i32
  }
  func.func @transform_3(%arg0: i32) -> (i32, i32) {
    %c0_i32 = arith.constant 0 : i32
    %c0_i32_0 = arith.constant 0 : i32
    %c0_i32_1 = arith.constant 0 : i32
    return %c0_i32, %c0_i32_0 : i32, i32
  }
  func.func @transform_4(%arg0: i32) -> (i32, i32) {
    %c0_i32 = arith.constant 0 : i32
    %c0_i32_0 = arith.constant 0 : i32
    %c0_i32_1 = arith.constant 0 : i32
    return %c0_i32, %c0_i32_0 : i32, i32
  }
  func.func @transform_5(%arg0: i32) -> (i32, i32) {
    %c0_i32 = arith.constant 0 : i32
    %c0_i32_0 = arith.constant 0 : i32
    %c0_i32_1 = arith.constant 0 : i32
    return %c0_i32, %c0_i32_0 : i32, i32
  }
  func.func @transform_6(%arg0: i32) -> (i32, i32) {
    %c0_i32 = arith.constant 0 : i32
    %c0_i32_0 = arith.constant 0 : i32
    %c0_i32_1 = arith.constant 0 : i32
    return %c0_i32, %c0_i32_0 : i32, i32
  }
  func.func @transform_7(%arg0: i32) -> (i32, i32) {
    %c0_i32 = arith.constant 0 : i32
    %c0_i32_0 = arith.constant 0 : i32
    %c0_i32_1 = arith.constant 0 : i32
    return %c0_i32, %c0_i32_0 : i32, i32
  }
  func.func @transform_8(%arg0: i32) -> (i32, i32) {
    %c0_i32 = arith.constant 0 : i32
    %c0_i32_0 = arith.constant 0 : i32
    %c0_i32_1 = arith.constant 0 : i32
    return %c0_i32, %c0_i32_0 : i32, i32
  }
  func.func @transform_9(%arg0: i32) -> (i32, i32, i32) {
    %c0_i32 = arith.constant 0 : i32
    %c0_i32_0 = arith.constant 0 : i32
    %c0_i32_1 = arith.constant 0 : i32
    return %arg0, %c0_i32, %c0_i32_0 : i32, i32, i32
  }
}

</mosaic_0001>

<bundles_post_ra>
// kernel: tpu_custom_call.1
= control target key start
LH: loop header
LB: loop body
LE: loop exit
PB: predicated region body
PF: predicated region fallthrough
CT: control target
= control target key end

     0   :  { %v1939_v1 = vmov 0.0   ;;  %vm86_vm0 = vcmask 261120   ;;  %vm1940_vm1 = vmmov 0   ;;  %s2432_s0 = inlined_call_operand.vmem [shape: f32[2,8,32], index: 0, kind: input, shape index: {}]   ;;  %s2433_s1 = inlined_call_operand.vmem [shape: bf16[96,32], index: 1, kind: input, shape index: {}]   ;;  %s2434_s2 = inlined_call_operand.vmem [shape: f32[1,96], index: 2, kind: input, shape index: {}]   ;;  %s2435_s3 = inlined_call_operand.vmem [shape: bf16[8,8], index: 3, kind: input, shape index: {}]   ;;  %s2436_s4 = inlined_call_operand.vmem [shape: f32[1,8], index: 4, kind: input, shape index: {}]   ;;  %s2437_s5 = inlined_call_operand.vmem [shape: bf16[8,8], index: 5, kind: input, shape index: {}]   ;;  %s2438_s6 = inlined_call_operand.vmem [shape: f32[1,8], index: 6, kind: input, shape index: {}]   ;;  %s2439_s7 = inlined_call_operand.vmem [shape: bf16[32,32], index: 7, kind: input, shape index: {}]   ;;  %s2440_s8 = inlined_call_operand.vmem [shape: f32[1,32], index: 8, kind: input, shape index: {}]   ;;  %s2441_s9 = inlined_call_operand.hbm [shape: f32[2,8,32], index: 9, kind: output, shape index: {}]  }
   0x1   :  { %v1843_v0 = vld [vmem:[%s2433_s1] sm:$0xff]   ;;  %1664 = vmatprep.subr.bf16.mxu0 %v1939_v1  ;;  %v1844_v3 = vld [vmem:[%s2433_s1 + $0x8] sm:$0xff]   ;;  %1676 = vmatprep.mubr.msk.bf16.mxu0 %vm1940_vm1, %v1939_v1 }
   0x2   :  { %v91_v2 = vsel %vm86_vm0, %v1843_v0, 0  ;;  %v94_v4 = vsel %vm86_vm0, %v1844_v3, 0 }
   0x3   :  { %1665 = vmatpush3.bf16.xpose.msra.mxu0 %v91_v2 }
   0x4   :  { %1666 = vmatprep.subr.bf16.mxu0 %v1939_v1 }
   0x5   :  { %14 = vsyncpa [#allocation3], 0  ;;  %v1845_v5 = vld [vmem:[%s2433_s1 + $0x10] sm:$0xff]   ;;  %v1846_v7 = vld [vmem:[%s2433_s1 + $0x18] sm:$0xff]   ;;  %s1941_s26 = smov 112   ;;  %s1944_s27 = smov 64  }
   0x6   :  { %v97_v6 = vsel %vm86_vm0, %v1845_v5, 0  ;;  %v100_v8 = vsel %vm86_vm0, %v1846_v7, 0  ;;  %v1847_v9 = vld [vmem:[%s2433_s1 + $0x20] sm:$0xff]   ;;  %v1848_v11 = vld [vmem:[%s2433_s1 + $0x28] sm:$0xff]   ;;  %vm231_vm2 = vcmask 64512   ;;  %vm1041_vm4 = vcmask 1043456  }
   0x7   :  { %v103_v10 = vsel %vm86_vm0, %v1847_v9, 0  ;;  %v106_v12 = vsel %vm86_vm0, %v1848_v11, 0  ;;  %v34_v13 = vld [vmem:[%s2432_s0] sm:$0xff]  ;;  %v35_v14 = vld [vmem:[%s2432_s0 + $0x8] sm:$0xff]  ;;  %s1942_s0 = smov 120   ;;  %s1946_s14 = smov 8  }
   0x8   :  { %v36_v15 = vpack.c.bf16 %v35_v14, %v34_v13  ;;  %v1550_v16 = vld [vmem:[%s2434_s2] ss:$0 sm:$0xff]  ;;  %s1943_s2 = smov 104   ;;  %s1947_s17 = smov 16   ;;  %vm1454_vm5 = vcmask 130048   ;;  %vm1457_vm6 = vcmask 195584  }
   0x9   :  { %v211_v24 = vld [vmem:[%s2435_s3] sm:$0xf]  ;;  %s1945_s3 = smov 96   ;;  %s1949_s20 = smov [#allocation2]  }
   0xa   :  { %1804 = vmatprep.subr.msk.bf16.mxu1 %vm231_vm2, %v211_v24  ;;  %v245_v25 = vsel %vm231_vm2, %v211_v24, 0  ;;  %v312_v26 = vld [vmem:[%s2437_s5] sm:$0xf]  ;;  %s1539_s21 = sshll.u32 %s1949_s20, 4  ;;  %s1540_s21 = int_to_ptr.vmem [resolvable:$true] %s1539_s21 }
   0xb   :  { %1667 = vmatpush3.bf16.xpose.msra.mxu0 %v94_v4  ;;  %1681 = vmatpush3.bf16.xpose.msra.mxu1 %v245_v25  ;;  %v321_v48 = vsel %vm231_vm2, %v312_v26, 0  ;;  %s1915_s22 = scalar_lea.vmem %s1540_s21, 256  ;;  %p1920_p1 = scmp.lt.s32.totalorder %s1540_s21, %s1540_s21 }
   0xc   :  { %1668 = vmatprep.subr.bf16.mxu0 %v1939_v1  ;;  %1805 = vmatprep.subr.msk.bf16.mxu1 %vm231_vm2, %v312_v26  ;;  %p1916_p0 = scmp.ne.s32.totalorder %s1540_s21, %s1915_s22  ;;  %p1921_p2 = scmp.lt.s32.totalorder %s1915_s22, %s1915_s22 }
   0xe   :  { %p1922_p3 = por %p1921_p2, %p1920_p1 }
  0x10   :  { %p1923_p4 = pnand %p1922_p3, %p1916_p0 }
  0x13   :  { %1669 = vmatpush3.bf16.xpose.msra.mxu0 %v97_v6 }
  0x14   :  { %1670 = vmatprep.subr.bf16.mxu0 %v1939_v1 }
  0x1b   :  { %1671 = vmatpush3.bf16.xpose.msra.mxu0 %v100_v8 }
  0x1c   :  { %1672 = vmatprep.subr.bf16.mxu0 %v1939_v1 }
  0x23   :  { %1673 = vmatpush3.bf16.xpose.msra.mxu0 %v103_v10 }
  0x24   :  { %1674 = vmatprep.subr.bf16.mxu0 %v1939_v1 }
  0x2b   :  { %1675 = vmatpush3.bf16.xpose.msra.mxu0 %v106_v12 }
  0x2c   :  { %1724 = vmatprep.subr.bf16.mxu0 %v1939_v1 }
  0x32   :  { %1677 = vmatmul.mubr.msk.bf16.vlgmr.msra.gmra.mrb[0].mxu0 %vm86_vm0, %v36_v15 }
  0x33   :  { %1726 = vmatprep.mubr.msk.bf16.mxu0 %vm1940_vm1, %v1939_v1 }
 0x105   :  { %v142_v17 = vpop.f32.mrb[0].mxu0 }
 0x106   :  { %v2046_v18 = vadd.f32 %v1550_v16, %v142_v17  ;;  %v1678_v19 = vpop.f32.mrb[1].mxu0 }
 0x107   :  { %v145_v20 = vpop.f32.mrb[2].mxu0 }
 0x108   :  { %187 = vrot.lane.b32.xlu1 %v2046_v18, %s1941_s26  ;;  %181 = vrot.lane.b32.xlu0 %v2046_v18, %s1942_s0  ;;  %v1679_v21 = vpop.f32.mrb[3].mxu0  ;;  %v2052_v22 = vadd.f32 %v1550_v16, %v145_v20  ;;  %v199_v36 = vpack.c.bf16 %v2046_v18, %v2046_v18  ;;  %v149_v41 = vmul.f32 0.35355338, %v2046_v18 }
 0x10a   :  { %v207_v23 = vpack.c.bf16 %v2052_v22, %v2046_v18  ;;  %v200_v39 = vpack.c.bf16 %v2052_v22, %v2052_v22  ;;  %v2109_v43 = vmul.f32 0.35355338, %v2052_v22  ;;  %v171_v6 = vpack.c.bf16 %v149_v41, %v149_v41 }
 0x10c   :  { %189 = vrot.lane.b32.xlu1 %v2052_v22, %s1941_s26  ;;  %183 = vrot.lane.b32.xlu0 %v2052_v22, %s1942_s0  ;;  %v1818_v45 = vpack.i.bf16 %v2109_v43, %v149_v41  ;;  %v172_v9 = vpack.c.bf16 %v2109_v43, %v2109_v43 }
 0x110   :  { %195 = vrot.lane.b32.xlu1 %v2052_v22, %s1943_s2  ;;  %193 = vrot.lane.b32.xlu0 %v2046_v18, %s1943_s2 }
 0x114   :  { %223 = vrot.lane.b32.xlu0 %v207_v23, %s1944_s27  ;;  %v2178_v23 = vld [vmem:[%s2436_s4] ss:$0 sm:$0xff] }
 0x17a   :  { %v2074_v27 = vpop.permute.xlu1 %187  ;;  %v2076_v28 = vpop.permute.xlu0 %181 }
 0x17b   :  { %v201_v38 = vpack.c.bf16 %v2076_v28, %v2076_v28  ;;  %v203_v42 = vpack.c.bf16 %v2074_v27, %v2074_v27 }
 0x17e   :  { %v2078_v29 = vpop.permute.xlu1 %189  ;;  %v2080_v30 = vpop.permute.xlu0 %183 }
 0x17f   :  { %v209_v31 = vpack.c.bf16 %v2078_v29, %v2074_v27  ;;  %v208_v32 = vpack.c.bf16 %v2080_v30, %v2076_v28  ;;  %v202_v40 = vpack.c.bf16 %v2080_v30, %v2080_v30  ;;  %v204_v44 = vpack.c.bf16 %v2078_v29, %v2078_v29 }
 0x181   :  { %225 = vrot.lane.b32.xlu1 %v208_v32, %s1944_s27  ;;  %227 = vrot.lane.b32.xlu0 %v209_v31, %s1944_s27 }
 0x182   :  { %v2088_v33 = vpop.permute.xlu1 %195  ;;  %v2090_v34 = vpop.permute.xlu0 %193 }
 0x183   :  { %v210_v35 = vpack.c.bf16 %v2088_v33, %v2090_v34  ;;  %v206_v46 = vpack.c.bf16 %v2088_v33, %v2088_v33  ;;  %v205_v47 = vpack.c.bf16 %v2090_v34, %v2090_v34 }
 0x185   :  { %229 = vrot.lane.b32.xlu1 %v210_v35, %s1944_s27  ;;  %533 = vrot.lane.b32.xlu0 %v199_v36, %s1945_s3 }
 0x186   :  { %v224_v37 = vpop.permute.xlu0 %223 }
 0x187   :  { %1682 = vmatprep.mubr.msk.bf16.mxu1 %vm231_vm2, %v224_v37 }
 0x189   :  { %631 = vrot.lane.b32.xlu0 %v201_v38, %s1945_s3  ;;  %582 = vrot.lane.b32.xlu1 %v200_v39, %s1945_s3 }
 0x18d   :  { %680 = vrot.lane.b32.xlu0 %v202_v40, %s1945_s3  ;;  %153 = vrot.lane.b32.xlu1 %v149_v41, %s1942_s0 }
 0x191   :  { %729 = vrot.lane.b32.xlu0 %v203_v42, %s1945_s3  ;;  %155 = vrot.lane.b32.xlu1 %v2109_v43, %s1942_s0 }
 0x195   :  { %1819 = vrot.lane.b32.xlu0 %v1818_v45, %s1941_s26  ;;  %778 = vrot.lane.b32.xlu1 %v204_v44, %s1945_s3 }
 0x199   :  { %876 = vrot.lane.b32.xlu0 %v206_v46, %s1945_s3  ;;  %827 = vrot.lane.b32.xlu1 %v205_v47, %s1945_s3 }
 0x19d   :  { %1824 = vrot.lane.b32.xlu1 %v1818_v45, %s1943_s2 }
 0x1f3   :  { %v226_v49 = vpop.permute.xlu1 %225  ;;  %v228_v50 = vpop.permute.xlu0 %227 }
 0x1f4   :  { %1683 = vmatmul.mubr.msk.bf16.vlgmr.msra.gmra.mrb[0].mxu1 %vm231_vm2, %v226_v49 }
 0x1f5   :  { %1686 = vmatprep.mubr.msk.bf16.mxu1 %vm231_vm2, %v228_v50  ;;  %1691 = vmatpush3.bf16.xpose.msra.mxu1 %v321_v48 }
 0x1f6   :  { %1700 = vmatprep.subr.bf16.mxu1 %v1939_v1 }
 0x1f7   :  { %v230_v51 = vpop.permute.xlu1 %229  ;;  %v534_v52 = vpop.permute.xlu0 %533 }
 0x1f8   :  { %v539_v59 = vsel %vm231_vm2, %v534_v52, 0 }
 0x1fb   :  { %v632_v53 = vpop.permute.xlu0 %631  ;;  %v583_v54 = vpop.permute.xlu1 %582 }
 0x1fc   :  { %1687 = vmatmul.mubr.msk.bf16.gmra.mrb[4].mxu1 %vm231_vm2, %v230_v51  ;;  %v588_v8 = vsel %vm231_vm2, %v583_v54, 0  ;;  %v637_v10 = vsel %vm231_vm2, %v632_v53, 0 }
 0x1fd   :  { %1692 = vmatprep.mubr.msk.bf16.mxu1 %vm231_vm2, %v224_v37 }
 0x1ff   :  { %v681_v55 = vpop.permute.xlu0 %680  ;;  %v154_v56 = vpop.permute.xlu1 %153 }
 0x200   :  { %v173_v11 = vpack.c.bf16 %v154_v56, %v154_v56  ;;  %v686_v12 = vsel %vm231_vm2, %v681_v55, 0 }
 0x203   :  { %v730_v57 = vpop.permute.xlu0 %729  ;;  %v156_v58 = vpop.permute.xlu1 %155 }
 0x204   :  { %v735_v60 = vsel %vm231_vm2, %v730_v57, 0  ;;  %1693 = vmatmul.mubr.msk.bf16.vlgmr.msra.gmra.mrb[8].mxu1 %vm231_vm2, %v226_v49  ;;  %v174_v13 = vpack.c.bf16 %v156_v58, %v156_v58 }
 0x205   :  { %1701 = vmatpush3.bf16.xpose.msra.mxu1 %v539_v59  ;;  %1696 = vmatprep.mubr.msk.bf16.mxu1 %vm231_vm2, %v228_v50  ;;  %v924_v59 = vlaneseq }
 0x206   :  { %1725 = vmatpush3.bf16.xpose.msra.mxu0 %v735_v60  ;;  %1706 = vmatprep.subr.bf16.mxu1 %v1939_v1 }
 0x207   :  { %v1820_v61 = vpop.permute.xlu0 %1819  ;;  %v779_v62 = vpop.permute.xlu1 %778  ;;  %1736 = vmatprep.subr.bf16.mxu0 %v1939_v1 }
 0x208   :  { %v1821_v63 = vunpack.i.l.bf16 %v1820_v61  ;;  %v784_v14 = vsel %vm231_vm2, %v779_v62, 0  ;;  %v1822_v15 = vunpack.i.h.bf16 %v1820_v61  ;;  %v925_v62 = vshrl.u32 %v924_v59, 7 }
 0x20a   :  { %v175_v0 = vpack.c.bf16 %v1821_v63, %v1821_v63  ;;  %v176_v17 = vpack.c.bf16 %v1822_v15, %v1822_v15  ;;  %v927_v63 = vand.u32 127, %v924_v59 }
 0x20b   :  { %v828_v2 = vpop.permute.xlu1 %827  ;;  %v877_v16 = vpop.permute.xlu0 %876 }
 0x20c   :  { %v833_v3 = vsel %vm231_vm2, %v828_v2, 0  ;;  %1697 = vmatmul.mubr.msk.bf16.gmra.mrb[12].mxu1 %vm231_vm2, %v230_v51  ;;  %v882_v19 = vsel %vm231_vm2, %v877_v16, 0  ;;  %v2205_v51 = vld [vmem:[%s2438_s6] ss:$0 sm:$0xff]  ;;  %vm2214_vm3 = vcmp.ge.s32.totalorder %v925_v62, %v927_v63 }
 0x20d   :  { %1727 = vmatmul.mubr.msk.bf16.vlgmr.msra.gmra.mrb[4].mxu0 %vm231_vm2, %v175_v0  ;;  %1702 = vmatprep.mubr.msk.bf16.mxu1 %vm1940_vm1, %v1939_v1 }
 0x20e   :  { %1737 = vmatpush3.bf16.xpose.msra.mxu0 %v833_v3  ;;  %1738 = vmatprep.mubr.msk.bf16.mxu0 %vm1940_vm1, %v1939_v1 }
 0x20f   :  { %v1825_v4 = vpop.permute.xlu1 %1824  ;;  %1748 = vmatprep.subr.bf16.mxu0 %v1939_v1 }
 0x210   :  { %v1826_v5 = vunpack.i.l.bf16 %v1825_v4  ;;  %v1827_v20 = vunpack.i.h.bf16 %v1825_v4 }
 0x212   :  { %v177_v7 = vpack.c.bf16 %v1826_v5, %v1826_v5  ;;  %v178_v21 = vpack.c.bf16 %v1827_v20, %v1827_v20 }
 0x214   :  { %1703 = vmatmul.mubr.msk.bf16.vlgmr.msra.gmra.mrb[16].mxu1 %vm231_vm2, %v171_v6 }
 0x215   :  { %1707 = vmatpush3.bf16.xpose.msra.mxu1 %v588_v8  ;;  %1739 = vmatmul.mubr.msk.bf16.vlgmr.msra.gmra.mrb[8].mxu0 %vm231_vm2, %v177_v7 }
 0x216   :  { %1708 = vmatprep.mubr.msk.bf16.mxu1 %vm1940_vm1, %v1939_v1  ;;  %1712 = vmatprep.subr.bf16.mxu1 %v1939_v1 }
 0x217   :  { %1750 = vmatprep.mubr.msk.bf16.mxu0 %vm1940_vm1, %v1939_v1 }
 0x21c   :  { %1709 = vmatmul.mubr.msk.bf16.vlgmr.msra.gmra.mrb[20].mxu1 %vm231_vm2, %v172_v9 }
 0x21d   :  { %1713 = vmatpush3.bf16.xpose.msra.mxu1 %v637_v10  ;;  %1714 = vmatprep.mubr.msk.bf16.mxu1 %vm1940_vm1, %v1939_v1 }
 0x21e   :  { %1718 = vmatprep.subr.bf16.mxu1 %v1939_v1 }
 0x224   :  { %1715 = vmatmul.mubr.msk.bf16.vlgmr.msra.gmra.mrb[24].mxu1 %vm231_vm2, %v173_v11 }
 0x225   :  { %1719 = vmatpush3.bf16.xpose.msra.mxu1 %v686_v12  ;;  %1720 = vmatprep.mubr.msk.bf16.mxu1 %vm1940_vm1, %v1939_v1 }
 0x226   :  { %1730 = vmatprep.subr.bf16.mxu1 %v1939_v1 }
 0x22c   :  { %1721 = vmatmul.mubr.msk.bf16.vlgmr.msra.gmra.mrb[28].mxu1 %vm231_vm2, %v174_v13 }
 0x22d   :  { %1731 = vmatpush3.bf16.xpose.msra.mxu1 %v784_v14  ;;  %1732 = vmatprep.mubr.msk.bf16.mxu1 %vm1940_vm1, %v1939_v1 }
 0x22e   :  { %1742 = vmatprep.subr.bf16.mxu1 %v1939_v1 }
 0x234   :  { %1733 = vmatmul.mubr.msk.bf16.vlgmr.msra.gmra.mrb[32].mxu1 %vm231_vm2, %v176_v17 }
 0x235   :  { %1743 = vmatpush3.bf16.xpose.msra.mxu1 %v882_v19  ;;  %1744 = vmatprep.mubr.msk.bf16.mxu1 %vm1940_vm1, %v1939_v1 }
 0x236   :  { %1754 = vmatprep.subr.bf16.mxu1 %v1939_v1 }
 0x23c   :  { %1745 = vmatmul.mubr.msk.bf16.vlgmr.msra.gmra.mrb[36].mxu1 %vm231_vm2, %v178_v21 }
 0x23d   :  { %1756 = vmatprep.mubr.msk.bf16.mxu1 %vm1940_vm1, %v1939_v1 }
 0x2c7   :  { %v1684_v24 = vpop.f32.mrb[0].mxu1 }
 0x2c8   :  { %v290_v25 = vadd.f32 %v1684_v24, %v2178_v23  ;;  %v281_v26 = vpop.f32.mrb[1].mxu1 }
 0x2c9   :  { %v282_v31 = vadd.f32 %v2178_v23, %v281_v26  ;;  %v1685_v32 = vpop.f32.mrb[2].mxu1 }
 0x2ca   :  { %v284_v35 = vpop.f32.mrb[3].mxu1  ;;  %400 = vrot.lane.b32.xlu0 %v290_v25, %s1944_s27  ;;  %v293_v37 = vadd.f32 %v1685_v32, %v2178_v23 }
 0x2cb   :  { %v285_v36 = vadd.f32 %v2178_v23, %v284_v35  ;;  %396 = vrot.lane.b32.xlu1 %v282_v31, %s1944_s27 }
 0x2ce   :  { %398 = vrot.lane.b32.xlu0 %v285_v36, %s1944_s27 }
 0x2cf   :  { %v1688_v38 = vpop.f32.mrb[4].mxu1  ;;  %402 = vrot.lane.b32.xlu1 %v293_v37, %s1944_s27 }
 0x2d0   :  { %v306_v39 = vadd.f32 %v1688_v38, %v2178_v23  ;;  %v297_v40 = vpop.f32.mrb[5].mxu1 }
 0x2d1   :  { %v1689_v41 = vpop.f32.mrb[6].mxu1  ;;  %v298_v43 = vadd.f32 %v2178_v23, %v297_v40 }
 0x2d2   :  { %v300_v42 = vpop.f32.mrb[7].mxu1  ;;  %408 = vrot.lane.b32.xlu0 %v306_v39, %s1944_s27  ;;  %v309_v37 = vadd.f32 %v1689_v41, %v2178_v23 }
 0x2d3   :  { %v301_v39 = vadd.f32 %v2178_v23, %v300_v42 }
 0x2d6   :  { %404 = vrot.lane.b32.xlu0 %v298_v43, %s1944_s27 }
 0x2d7   :  { %v1694_v44 = vpop.f32.mrb[8].mxu1 }
 0x2d8   :  { %v2192_v45 = vpop.f32.mrb[9].mxu1  ;;  %v366_v60 = vadd.f32 %v1694_v44, %v2205_v51 }
 0x2d9   :  { %v2194_v46 = vpop.f32.mrb[10].mxu1  ;;  %v358_v59 = vadd.f32 %v2205_v51, %v2192_v45 }
 0x2da   :  { %v2196_v47 = vpop.f32.mrb[11].mxu1  ;;  %v1570_v7 = vmul.f32 -1.442695, %v366_v60  ;;  %v369_v63 = vadd.f32 %v2194_v46, %v2205_v51 }
 0x2db   :  { %v1568_v62 = vmul.f32 -1.442695, %v358_v59 }
 0x2dc   :  { %1851 = vpow2.f32 %v1570_v7 }
 0x2df   :  { %v2198_v48 = vpop.f32.mrb[12].mxu1 }
 0x2e0   :  { %v771_v49 = vpop.f32.mrb[4].mxu0  ;;  %v2200_v50 = vpop.f32.mrb[13].mxu1 }
 0x2e1   :  { %v1728_v52 = vpop.f32.mrb[5].mxu0  ;;  %v1699_v53 = vpop.f32.mrb[14].mxu1  ;;  %v2220_v10 = vsel %vm2214_vm3, %v771_v49, -1e+30 }
 0x2e2   :  { %v2208_v54 = vadd.f32 %v1699_v53, %v2205_v51  ;;  %v774_v55 = vpop.f32.mrb[6].mxu0  ;;  %v376_v56 = vpop.f32.mrb[15].mxu1  ;;  %v951_v16 = vsel %vm231_vm2, %v2220_v10, -inf }
 0x2e3   :  { %v2211_v57 = vadd.f32 %v2205_v51, %v376_v56  ;;  %v1729_v58 = vpop.f32.mrb[7].mxu0 }
 0x2e4   :  { %v382_v58 = vadd.f32 %v2198_v48, %v2205_v51 }
 0x2e6   :  { %v1852_v21 = vpop.eup %1851  ;;  %v1574_v60 = vmul.f32 -1.442695, %v382_v58 }
 0x2e7   :  { %v575_v61 = vpop.f32.mrb[16].mxu1  ;;  %v454_v26 = vadd.f32 1.0, %v1852_v21 }
 0x2e8   :  { %v869_v0 = vpop.f32.mrb[8].mxu0  ;;  %v1704_v2 = vpop.f32.mrb[17].mxu1  ;;  %v2224_v13 = vsel %vm2214_vm3, %v575_v61, -1e+30  ;;  %v374_v61 = vadd.f32 %v2205_v51, %v2200_v50 }
 0x2e9   :  { %v1740_v3 = vpop.f32.mrb[9].mxu0  ;;  %v578_v4 = vpop.f32.mrb[18].mxu1  ;;  %v939_v17 = vsel %vm231_vm2, %v2224_v13, -inf  ;;  %1853 = vrcp.f32 %v454_v26  ;;  %v2263_v45 = vsel %vm2214_vm3, %v869_v0, -1e+30 }
 0x2ea   :  { %v872_v5 = vpop.f32.mrb[10].mxu0  ;;  %v1705_v6 = vpop.f32.mrb[19].mxu1  ;;  %1855 = vpow2.f32 %v1574_v60  ;;  %v1572_v2 = vmul.f32 -1.442695, %v374_v61  ;;  %v1571_v3 = vmul.f32 -1.442695, %v369_v63  ;;  %v361_v4 = vadd.f32 %v2205_v51, %v2196_v47 }
 0x2eb   :  { %v1741_v8 = vpop.f32.mrb[11].mxu0  ;;  %1857 = vpow2.f32 %v1568_v62  ;;  %v957_v5 = vsel %vm231_vm2, %v2263_v45, -inf  ;;  %v1575_v51 = vmul.f32 -1.442695, %v2208_v54 }
 0x2ec   :  { %1859 = vpow2.f32 %v1572_v2  ;;  %v1569_v50 = vmul.f32 -1.442695, %v361_v4  ;;  %v1573_v8 = vmul.f32 -1.442695, %v2211_v57 }
 0x2ed   :  { %1861 = vpow2.f32 %v1571_v3 }
 0x2ee   :  { %1863 = vpow2.f32 %v1569_v50 }
 0x2ef   :  { %v624_v11 = vpop.f32.mrb[20].mxu1  ;;  %1865 = vpow2.f32 %v1575_v51 }
 0x2f0   :  { %v1710_v12 = vpop.f32.mrb[21].mxu1  ;;  %v2271_v47 = vsel %vm2214_vm3, %v624_v11, -1e+30  ;;  %1867 = vpow2.f32 %v1573_v8 }
 0x2f1   :  { %v627_v14 = vpop.f32.mrb[22].mxu1  ;;  %v942_v7 = vsel %vm231_vm2, %v2271_v47, -inf }
 0x2f2   :  { %v1711_v15 = vpop.f32.mrb[23].mxu1 }
 0x2f3   :  { %952 = vmax.xlane.f32.xlu1 %v951_v16  ;;  %v1854_v52 = vpop.eup %1853 }
 0x2f4   :  { %v1856_v6 = vpop.eup %1855 }
 0x2f5   :  { %940 = vmax.xlane.f32.xlu0 %v939_v17  ;;  %v1858_v0 = vpop.eup %1857  ;;  %v458_v12 = vadd.f32 1.0, %v1856_v6 }
 0x2f6   :  { %v1860_v14 = vpop.eup %1859  ;;  %v452_v15 = vadd.f32 1.0, %v1858_v0 }
 0x2f7   :  { %v673_v19 = vpop.f32.mrb[24].mxu1  ;;  %v1862_v16 = vpop.eup %1861  ;;  %1869 = vrcp.f32 %v458_v12  ;;  %v456_v9 = vadd.f32 1.0, %v1860_v14 }
 0x2f8   :  { %v1716_v20 = vpop.f32.mrb[25].mxu1  ;;  %v2259_v48 = vsel %vm2214_vm3, %v673_v19, -1e+30  ;;  %1871 = vrcp.f32 %v452_v15  ;;  %v455_v11 = vadd.f32 1.0, %v1862_v16  ;;  %v1864_v17 = vpop.eup %1863 }
 0x2f9   :  { %v676_v24 = vpop.f32.mrb[26].mxu1  ;;  %v945_v46 = vsel %vm231_vm2, %v2259_v48, -inf  ;;  %1873 = vrcp.f32 %v456_v9  ;;  %v453_v54 = vadd.f32 1.0, %v1864_v17  ;;  %v1866_v19 = vpop.eup %1865 }
 0x2fa   :  { %v1717_v25 = vpop.f32.mrb[27].mxu1  ;;  %1875 = vrcp.f32 %v455_v11  ;;  %v1868_v20 = vpop.eup %1867  ;;  %v459_v21 = vadd.f32 1.0, %v1866_v19 }
 0x2fb   :  { %1877 = vrcp.f32 %v453_v54  ;;  %v457_v25 = vadd.f32 1.0, %v1868_v20 }
 0x2fc   :  { %1879 = vrcp.f32 %v459_v21 }
 0x2fd   :  { %1881 = vrcp.f32 %v457_v25 }
 0x2ff   :  { %v722_v31 = vpop.f32.mrb[28].mxu1 }
 0x300   :  { %v2232_v32 = vsel %vm2214_vm3, %v722_v31, -1e+30  ;;  %v1722_v35 = vpop.f32.mrb[29].mxu1 }
 0x301   :  { %v725_v36 = vpop.f32.mrb[30].mxu1  ;;  %v1870_v57 = vpop.eup %1869 }
 0x302   :  { %v1723_v38 = vpop.f32.mrb[31].mxu1  ;;  %v1872_v24 = vpop.eup %1871 }
 0x303   :  { %v1874_v26 = vpop.eup %1873  ;;  %v948_v38 = vsel %vm231_vm2, %v2232_v32, -inf }
 0x304   :  { %410 = vrot.lane.b32.xlu1 %v309_v37, %s1944_s27  ;;  %v1876_v31 = vpop.eup %1875 }
 0x305   :  { %v1878_v35 = vpop.eup %1877 }
 0x306   :  { %v1880_v36 = vpop.eup %1879 }
 0x307   :  { %v820_v40 = vpop.f32.mrb[32].mxu1  ;;  %v1882_v37 = vpop.eup %1881 }
 0x308   :  { %v2239_v43 = vsel %vm2214_vm3, %v820_v40, -1e+30  ;;  %v1734_v44 = vpop.f32.mrb[33].mxu1  ;;  %406 = vrot.lane.b32.xlu1 %v301_v39, %s1944_s27 }
 0x309   :  { %v823_v49 = vpop.f32.mrb[34].mxu1  ;;  %v954_v39 = vsel %vm231_vm2, %v2239_v43, -inf }
 0x30a   :  { %v1735_v53 = vpop.f32.mrb[35].mxu1 }
 0x30b   :  { %488 = vrot.lane.b32.xlu0 %v1854_v52, %s1944_s27 }
 0x30f   :  { %v918_v55 = vpop.f32.mrb[36].mxu1 }
 0x310   :  { %v2245_v41 = vsel %vm2214_vm3, %v918_v55, -1e+30  ;;  %v1746_v56 = vpop.f32.mrb[37].mxu1 }
 0x311   :  { %v921_v23 = vpop.f32.mrb[38].mxu1  ;;  %v960_v40 = vsel %vm231_vm2, %v2245_v41, -inf }
 0x312   :  { %v1747_v42 = vpop.f32.mrb[39].mxu1 }
 0x32a   :  { %946 = vmax.xlane.f32.xlu0 %v945_v46 }
 0x32c   :  { %958 = vmax.xlane.f32.xlu1 %v957_v5 }
 0x330   :  { %943 = vmax.xlane.f32.xlu1 %v942_v7 }
 0x33c   :  { %v401_v44 = vpop.permute.xlu0 %400 }
 0x33d   :  { %v422_v56 = vadd.f32 %v401_v44, %v2076_v28  ;;  %v397_v59 = vpop.permute.xlu1 %396 }
 0x33e   :  { %v420_v28 = vadd.f32 %v397_v59, %v2046_v18 }
 0x340   :  { %496 = vrot.lane.b32.xlu0 %v1870_v57, %s1944_s27  ;;  %v399_v49 = vpop.permute.xlu0 %398 }
 0x341   :  { %484 = vrot.lane.b32.xlu1 %v1872_v24, %s1944_s27  ;;  %v403_v60 = vpop.permute.xlu1 %402  ;;  %v421_v8 = vadd.f32 %v399_v49, %v2052_v22 }
 0x344   :  { %492 = vrot.lane.b32.xlu0 %v1874_v26, %s1944_s27  ;;  %v409_v52 = vpop.permute.xlu0 %408 }
 0x345   :  { %490 = vrot.lane.b32.xlu1 %v1876_v31, %s1944_s27  ;;  %v426_v4 = vadd.f32 %v409_v52, %v2090_v34 }
 0x348   :  { %v2290_v53 = vpop.permute.xlu0 %404 }
 0x349   :  { %486 = vrot.lane.b32.xlu1 %v1878_v35, %s1944_s27 }
 0x34d   :  { %498 = vrot.lane.b32.xlu1 %v1880_v36, %s1944_s27 }
 0x351   :  { %494 = vrot.lane.b32.xlu1 %v1882_v37, %s1944_s27 }
 0x363   :  { %949 = vmax.xlane.f32.xlu0 %v948_v38 }
 0x367   :  { %955 = vmax.xlane.f32.xlu0 %v954_v39  ;;  %v423_v39 = vadd.f32 %v403_v60, %v2080_v30 }
 0x36b   :  { %961 = vmax.xlane.f32.xlu0 %v960_v40 }
 0x380   :  { %v953_v61 = vpop.xlane.xlu1 %952 }
 0x381   :  { %v967_v34 = vsub.f32 %v2220_v10, %v953_v61 }
 0x382   :  { %v941_v55 = vpop.xlane.xlu0 %940 }
 0x383   :  { %v963_v16 = vsub.f32 %v2224_v13, %v941_v55  ;;  %v979_v9 = vmul.f32 1.442695, %v967_v34 }
 0x384   :  { %v2294_v62 = vpop.permute.xlu1 %410 }
 0x385   :  { %v971_v11 = vmul.f32 1.442695, %v963_v16  ;;  %1883 = vpow2.f32 %v979_v9 }
 0x386   :  { %v489_v23 = vpop.permute.xlu0 %488 }
 0x387   :  { %v510_v42 = vmul.f32 %v489_v23, %v422_v56  ;;  %1885 = vpow2.f32 %v971_v11  ;;  %v427_v23 = vadd.f32 %v2294_v62, %v2088_v33 }
 0x388   :  { %v407_v63 = vpop.permute.xlu1 %406 }
 0x389   :  { %v1606_v58 = vpack.c.bf16 %v510_v42, %v510_v42  ;;  %v425_v52 = vadd.f32 %v407_v63, %v2078_v29  ;;  %v424_v29 = vadd.f32 %v2290_v53, %v2074_v27 }
 0x38b   :  { %1135 = vrot.lane.b32.xlu1 %v1606_v58, %s1944_s27 }
 0x38f   :  { %v2308_v21 = vpop.eup %1883 }
 0x390   :  { %v999_v13 = vsel %vm231_vm2, %v2308_v21, 0.0 }
 0x391   :  { %v2310_v10 = vpop.eup %1885 }
 0x3b7   :  { %v947_v2 = vpop.xlane.xlu0 %946 }
 0x3b8   :  { %v965_v17 = vsub.f32 %v2259_v48, %v947_v2 }
 0x3b9   :  { %v959_v3 = vpop.xlane.xlu1 %958 }
 0x3ba   :  { %v969_v18 = vsub.f32 %v2263_v45, %v959_v3  ;;  %v975_v22 = vmul.f32 1.442695, %v965_v17 }
 0x3bb   :  { %v497_v50 = vpop.permute.xlu0 %496 }
 0x3bc   :  { %v2297_v46 = vmul.f32 %v497_v50, %v426_v4  ;;  %v983_v54 = vmul.f32 1.442695, %v969_v18 }
 0x3bd   :  { %v944_v5 = vpop.xlane.xlu1 %943 }
 0x3be   :  { %v964_v19 = vsub.f32 %v2271_v47, %v944_v5  ;;  %1887 = vpow2.f32 %v983_v54  ;;  %v987_v47 = vsel %vm231_vm2, %v2310_v10, 0.0 }
 0x3bf   :  { %1889 = vpow2.f32 %v975_v22  ;;  %v493_v48 = vpop.permute.xlu0 %492 }
 0x3c0   :  { %v973_v20 = vmul.f32 1.442695, %v964_v19  ;;  %v512_v59 = vmul.f32 %v493_v48, %v424_v29 }
 0x3c1   :  { %v485_v51 = vpop.permute.xlu1 %484 }
 0x3c2   :  { %v508_v6 = vmul.f32 %v485_v51, %v420_v28  ;;  %1891 = vpow2.f32 %v973_v20  ;;  %v1608_v60 = vpack.c.bf16 %v512_v59, %v512_v59 }
 0x3c4   :  { %v1604_v0 = vpack.c.bf16 %v508_v6, %v508_v6  ;;  %v1610_v6 = vpack.c.bf16 %v2297_v46, %v2297_v46 }
 0x3c5   :  { %v491_v7 = vpop.permute.xlu1 %490 }
 0x3c6   :  { %1036 = vrot.lane.b32.xlu1 %v1604_v0, %s1944_s27  ;;  %v511_v40 = vmul.f32 %v491_v7, %v423_v39 }
 0x3c8   :  { %v2314_v45 = vpop.eup %1887 }
 0x3c9   :  { %v487_v12 = vpop.permute.xlu1 %486  ;;  %v2318_v57 = vpop.eup %1889  ;;  %v1005_v24 = vsel %vm231_vm2, %v2314_v45, 0.0 }
 0x3ca   :  { %v509_v14 = vmul.f32 %v487_v12, %v421_v8  ;;  %v993_v31 = vsel %vm231_vm2, %v2318_v57, 0.0 }
 0x3cc   :  { %v1605_v15 = vpack.c.bf16 %v509_v14, %v509_v14  ;;  %v2322_v25 = vpop.eup %1891 }
 0x3cd   :  { %v990_v36 = vsel %vm231_vm2, %v2322_v25, 0.0  ;;  %v499_v38 = vpop.permute.xlu1 %498 }
 0x3ce   :  { %1086 = vrot.lane.b32.xlu0 %v1605_v15, %s1944_s27  ;;  %v515_v42 = vmul.f32 %v499_v38, %v427_v23 }
 0x3d0   :  { %v1611_v30 = vpack.c.bf16 %v515_v42, %v515_v42 }
 0x3d1   :  { %v495_v44 = vpop.permute.xlu1 %494 }
 0x3d2   :  { %v513_v56 = vmul.f32 %v495_v44, %v425_v52 }
 0x3d4   :  { %v1609_v58 = vpack.c.bf16 %v513_v56, %v513_v56 }
 0x3ea   :  { %1000 = vadd.xlane.f32.xlu1 %v999_v13 }
 0x3ed   :  { %988 = vadd.xlane.f32.xlu0 %v987_v47 }
 0x3ee   :  { %1006 = vadd.xlane.f32.xlu1 %v1005_v24 }
 0x3f0   :  { %v950_v26 = vpop.xlane.xlu0 %949 }
 0x3f1   :  { %v966_v35 = vsub.f32 %v2232_v32, %v950_v26  ;;  %994 = vadd.xlane.f32.xlu0 %v993_v31  ;;  %v1607_v32 = vpack.c.bf16 %v511_v40, %v511_v40 }
 0x3f2   :  { %991 = vadd.xlane.f32.xlu1 %v990_v36 }
 0x3f3   :  { %v977_v37 = vmul.f32 1.442695, %v966_v35 }
 0x3f4   :  { %v956_v61 = vpop.xlane.xlu0 %955 }
 0x3f5   :  { %1893 = vpow2.f32 %v977_v37  ;;  %v968_v63 = vsub.f32 %v2239_v43, %v956_v61 }
 0x3f7   :  { %v981_v62 = vmul.f32 1.442695, %v968_v63 }
 0x3f8   :  { %v962_v33 = vpop.xlane.xlu0 %961 }
 0x3f9   :  { %v970_v2 = vsub.f32 %v2245_v41, %v962_v33  ;;  %1895 = vpow2.f32 %v981_v62 }
 0x3fb   :  { %v985_v3 = vmul.f32 1.442695, %v970_v2 }
 0x3fd   :  { %1897 = vpow2.f32 %v985_v3  ;;  %v1136_v50 = vpop.permute.xlu1 %1135 }
 0x3fe   :  { %v1141_v11 = vsel %vm1041_vm4, %v1136_v50, 0 }
 0x3ff   :  { %v2330_v49 = vpop.eup %1893 }
 0x400   :  { %v996_v55 = vsel %vm231_vm2, %v2330_v49, 0.0 }
 0x401   :  { %997 = vadd.xlane.f32.xlu0 %v996_v55 }
 0x403   :  { %1184 = vrot.lane.b32.xlu1 %v1607_v32, %s1944_s27  ;;  %v2345_v4 = vpop.eup %1895 }
 0x404   :  { %v1002_v27 = vsel %vm231_vm2, %v2345_v4, 0.0 }
 0x407   :  { %1282 = vrot.lane.b32.xlu1 %v1609_v58, %s1944_s27  ;;  %v2349_v53 = vpop.eup %1897 }
 0x408   :  { %v1008_v28 = vsel %vm231_vm2, %v2349_v53, 0.0 }
 0x40b   :  { %1380 = vrot.lane.b32.xlu1 %v1611_v30, %s1944_s27 }
 0x417   :  { %1233 = vrot.lane.b32.xlu0 %v1608_v60, %s1944_s27 }
 0x436   :  { %1003 = vadd.xlane.f32.xlu0 %v1002_v27  ;;  %v1849_v27 = vld [vmem:[%s2439_s7] sm:$0xff]  }
 0x438   :  { %v1037_v5 = vpop.permute.xlu1 %1036 }
 0x439   :  { %v1043_v43 = vsel %vm1041_vm4, %v1037_v5, 0 }
 0x43a   :  { %1009 = vadd.xlane.f32.xlu0 %v1008_v28  ;;  %1749 = vmatpush3.bf16.msra.mxu0 %v1043_v43 }
 0x43b   :  { %1760 = vmatprep.subr.bf16.mxu0 %v1939_v1 }
 0x440   :  { %v1087_v41 = vpop.permute.xlu0 %1086 }
 0x441   :  { %v1092_v51 = vsel %vm1041_vm4, %v1087_v41, 0 }
 0x442   :  { %1755 = vmatpush3.bf16.msra.mxu1 %v1092_v51 }
 0x443   :  { %1766 = vmatprep.subr.bf16.mxu1 %v1939_v1 }
 0x450   :  { %1331 = vrot.lane.b32.xlu0 %v1610_v6, %s1944_s27 }
 0x477   :  { %v1001_v0 = vpop.xlane.xlu1 %1000 }
 0x47a   :  { %v989_v7 = vpop.xlane.xlu0 %988 }
 0x47b   :  { %1899 = vrcp.f32 %v989_v7  ;;  %v1007_v8 = vpop.xlane.xlu1 %1006 }
 0x47e   :  { %v995_v12 = vpop.xlane.xlu0 %994 }
 0x47f   :  { %1901 = vrcp.f32 %v995_v12  ;;  %v992_v14 = vpop.xlane.xlu1 %991  ;;  %v1850_v12 = vld [vmem:[%s2439_s7 + $0x8] sm:$0xff]   ;;  %s1948_s7 = smov 24  }
 0x480   :  { %1903 = vrcp.f32 %v992_v14  ;;  %v1489_v14 = vsel %vm86_vm0, %v1850_v12, 0 }
 0x481   :  { %1905 = vrcp.f32 %v1001_v0 }
 0x483   :  { %v1185_v54 = vpop.permute.xlu1 %1184 }
 0x484   :  { %v1190_v20 = vsel %vm1041_vm4, %v1185_v54, 0 }
 0x485   :  { %v1900_v15 = vpop.eup %1899 }
 0x486   :  { %v1019_v34 = vmul.f32 %v1900_v15, %v2310_v10 }
 0x487   :  { %v1283_v31 = vpop.permute.xlu1 %1282 }
 0x488   :  { %v1027_v16 = vpack.c.bf16 %v1019_v34, %v1019_v34  ;;  %v1288_v36 = vsel %vm1041_vm4, %v1283_v31, 0 }
 0x489   :  { %v1902_v9 = vpop.eup %1901 }
 0x48a   :  { %v1904_v18 = vpop.eup %1903  ;;  %1751 = vmatmul.mubr.msk.bf16.vlgmr.msra.gmra.mrb[12].mxu0 %vm231_vm2, %v1027_v16  ;;  %v1021_v17 = vmul.f32 %v1902_v9, %v2318_v57 }
 0x48b   :  { %v1020_v46 = vmul.f32 %v1904_v18, %v2322_v25  ;;  %1761 = vmatpush3.bf16.msra.mxu0 %v1141_v11  ;;  %1762 = vmatprep.mubr.msk.bf16.mxu0 %vm1940_vm1, %v1939_v1  ;;  %v1906_v13 = vpop.eup %1905  ;;  %v1381_v32 = vpop.permute.xlu1 %1380 }
 0x48c   :  { %1772 = vmatprep.subr.bf16.mxu0 %v1939_v1  ;;  %v1029_v10 = vpack.c.bf16 %v1021_v17, %v1021_v17  ;;  %v1023_v57 = vmul.f32 %v1906_v13, %v2308_v21 }
 0x48d   :  { %v1028_v19 = vpack.c.bf16 %v1020_v46, %v1020_v46 }
 0x48e   :  { %v998_v22 = vpop.xlane.xlu0 %997  ;;  %v1031_v24 = vpack.c.bf16 %v1023_v57, %v1023_v57 }
 0x48f   :  { %1907 = vrcp.f32 %v998_v22  ;;  %1757 = vmatmul.mubr.msk.bf16.vlgmr.msra.gmra.mrb[40].mxu1 %vm231_vm2, %v1028_v19 }
 0x490   :  { %1767 = vmatpush3.bf16.msra.mxu1 %v1190_v20  ;;  %1768 = vmatprep.mubr.msk.bf16.mxu1 %vm1940_vm1, %v1939_v1  ;;  %1909 = vrcp.f32 %v1007_v8 }
 0x491   :  { %1778 = vmatprep.subr.bf16.mxu1 %v1939_v1 }
 0x492   :  { %v1234_v48 = vpop.permute.xlu0 %1233  ;;  %1763 = vmatmul.mubr.msk.bf16.vlgmr.msra.gmra.mrb[16].mxu0 %vm231_vm2, %v1029_v10 }
 0x493   :  { %v1239_v47 = vsel %vm1041_vm4, %v1234_v48, 0  ;;  %1774 = vmatprep.mubr.msk.bf16.mxu0 %vm1940_vm1, %v1939_v1 }
 0x494   :  { %1773 = vmatpush3.bf16.msra.mxu0 %v1239_v47 }
 0x495   :  { %1784 = vmatprep.subr.bf16.mxu0 %v1939_v1 }
 0x499   :  { %v1908_v25 = vpop.eup %1907 }
 0x49a   :  { %v1022_v26 = vmul.f32 %v1908_v25, %v2330_v49  ;;  %1775 = vmatmul.mubr.msk.bf16.vlgmr.msra.gmra.mrb[20].mxu0 %vm231_vm2, %v1031_v24  ;;  %v1910_v37 = vpop.eup %1909 }
 0x49b   :  { %1786 = vmatprep.mubr.msk.bf16.mxu0 %vm1940_vm1, %v1939_v1  ;;  %v1025_v39 = vmul.f32 %v1910_v37, %v2314_v45  ;;  %v1386_v45 = vsel %vm1041_vm4, %v1381_v32, 0 }
 0x49c   :  { %v1030_v35 = vpack.c.bf16 %v1022_v26, %v1022_v26 }
 0x49d   :  { %v1033_v52 = vpack.c.bf16 %v1025_v39, %v1025_v39 }
 0x49e   :  { %1769 = vmatmul.mubr.msk.bf16.vlgmr.msra.gmra.mrb[44].mxu1 %vm231_vm2, %v1030_v35 }
 0x49f   :  { %1779 = vmatpush3.bf16.msra.mxu1 %v1288_v36  ;;  %1780 = vmatprep.mubr.msk.bf16.mxu1 %vm1940_vm1, %v1939_v1 }
 0x4a0   :  { %1790 = vmatprep.subr.bf16.mxu1 %v1939_v1 }
 0x4c3   :  { %v1004_v21 = vpop.xlane.xlu0 %1003 }
 0x4c4   :  { %1911 = vrcp.f32 %v1004_v21 }
 0x4c7   :  { %v1010_v38 = vpop.xlane.xlu0 %1009 }
 0x4c8   :  { %1913 = vrcp.f32 %v1010_v38 }
 0x4cb   :  { %v1332_v40 = vpop.permute.xlu0 %1331 }
 0x4cc   :  { %v1337_v44 = vsel %vm1041_vm4, %v1332_v40, 0 }
 0x4cd   :  { %1785 = vmatpush3.bf16.msra.mxu0 %v1337_v44 }
 0x4ce   :  { %v1912_v49 = vpop.eup %1911  ;;  %1796 = vmatprep.subr.bf16.mxu0 %v1939_v1 }
 0x4cf   :  { %v1024_v55 = vmul.f32 %v1912_v49, %v2345_v4  ;;  %v1600_v49 = vld [vmem:[%s2440_s8] ss:$0 sm:$0xff] }
 0x4d0   :  { %1787 = vmatmul.mubr.msk.bf16.vlgmr.msra.gmra.mrb[24].mxu0 %vm231_vm2, %v1033_v52 }
 0x4d1   :  { %v1032_v56 = vpack.c.bf16 %v1024_v55, %v1024_v55  ;;  %1800 = vmatprep.mubr.msk.bf16.mxu0 %vm1940_vm1, %v1939_v1 }
 0x4d2   :  { %v1914_v23 = vpop.eup %1913 }
 0x4d3   :  { %1781 = vmatmul.mubr.msk.bf16.vlgmr.msra.gmra.mrb[48].mxu1 %vm231_vm2, %v1032_v56  ;;  %v1026_v42 = vmul.f32 %v1914_v23, %v2349_v53  ;;  %v1486_v53 = vsel %vm86_vm0, %v1849_v27, 0 }
 0x4d4   :  { %1791 = vmatpush3.bf16.msra.mxu1 %v1386_v45  ;;  %1792 = vmatprep.mubr.msk.bf16.mxu1 %vm1940_vm1, %v1939_v1 }
 0x4d5   :  { %v1034_v58 = vpack.c.bf16 %v1026_v42, %v1026_v42 }
 0x4d6   :  { %1797 = vmatpush3.bf16.xpose.msra.mxu0 %v1486_v53 }
 0x4d7   :  { %1798 = vmatprep.subr.bf16.mxu0 %v1939_v1 }
 0x4db   :  { %1793 = vmatmul.mubr.msk.bf16.vlgmr.msra.gmra.mrb[52].mxu1 %vm231_vm2, %v1034_v58 }
 0x4de   :  { %1799 = vmatpush3.bf16.xpose.msra.mxu0 %v1489_v14 }
 0x55d   :  { %v1079_v30 = vpop.f32.mrb[12].mxu0 }
 0x55e   :  { %v1752_v29 = vpop.f32.mrb[13].mxu0 }
 0x55f   :  { %v1082_v59 = vpop.f32.mrb[14].mxu0 }
 0x560   :  { %v1753_v60 = vpop.f32.mrb[15].mxu0 }
 0x562   :  { %v1128_v61 = vpop.f32.mrb[40].mxu1 }
 0x563   :  { %v1758_v63 = vpop.f32.mrb[41].mxu1 }
 0x564   :  { %v1131_v33 = vpop.f32.mrb[42].mxu1 }
 0x565   :  { %v1759_v62 = vpop.f32.mrb[43].mxu1  ;;  %v1177_v2 = vpop.f32.mrb[16].mxu0 }
 0x566   :  { %v1764_v3 = vpop.f32.mrb[17].mxu0 }
 0x567   :  { %v1180_v4 = vpop.f32.mrb[18].mxu0 }
 0x568   :  { %v1765_v50 = vpop.f32.mrb[19].mxu0 }
 0x56d   :  { %v1275_v5 = vpop.f32.mrb[20].mxu0 }
 0x56e   :  { %v1776_v43 = vpop.f32.mrb[21].mxu0 }
 0x56f   :  { %v1278_v28 = vpop.f32.mrb[22].mxu0 }
 0x570   :  { %v1777_v41 = vpop.f32.mrb[23].mxu0 }
 0x571   :  { %v1226_v51 = vpop.f32.mrb[44].mxu1 }
 0x572   :  { %v1828_v6 = vpack.i.bf16 %v1226_v51, %v1177_v2  ;;  %v1770_v0 = vpop.f32.mrb[45].mxu1 }
 0x573   :  { %v1229_v7 = vpop.f32.mrb[46].mxu1 }
 0x574   :  { %v1771_v8 = vpop.f32.mrb[47].mxu1  ;;  %1829 = vrot.lane.b32.xlu0 %v1828_v6, %s1946_s14 }
 0x5a3   :  { %v1373_v15 = vpop.f32.mrb[24].mxu0 }
 0x5a4   :  { %v1788_v1 = vpop.f32.mrb[25].mxu0 }
 0x5a5   :  { %v1376_v34 = vpop.f32.mrb[26].mxu0 }
 0x5a6   :  { %v1324_v16 = vpop.f32.mrb[48].mxu1  ;;  %v1789_v9 = vpop.f32.mrb[27].mxu0 }
 0x5a7   :  { %v1833_v18 = vpack.i.bf16 %v1324_v16, %v1275_v5  ;;  %v1782_v11 = vpop.f32.mrb[49].mxu1 }
 0x5a8   :  { %v1327_v46 = vpop.f32.mrb[50].mxu1 }
 0x5a9   :  { %v1783_v17 = vpop.f32.mrb[51].mxu1  ;;  %1834 = vrot.lane.b32.xlu1 %v1833_v18, %s1947_s17 }
 0x5ae   :  { %v1422_v54 = vpop.f32.mrb[52].mxu1 }
 0x5af   :  { %v1838_v19 = vpack.i.bf16 %v1422_v54, %v1373_v15  ;;  %v1794_v22 = vpop.f32.mrb[53].mxu1 }
 0x5b0   :  { %v1425_v20 = vpop.f32.mrb[54].mxu1 }
 0x5b1   :  { %v1795_v10 = vpop.f32.mrb[55].mxu1  ;;  %1839 = vrot.lane.b32.xlu0 %v1838_v19, %s1948_s7 }
 0x5e6   :  { %v1830_v13 = vpop.permute.xlu0 %1829 }
 0x5e7   :  { %v1832_v47 = vunpack.i.h.bf16 %v1830_v13  ;;  %v1831_v57 = vunpack.i.l.bf16 %v1830_v13 }
 0x5e9   :  { %v1453_v31 = vsel %vm231_vm2, %v1128_v61, %v1832_v47  ;;  %v1452_v35 = vsel %vm231_vm2, %v1079_v30, %v1831_v57 }
 0x61b   :  { %v1835_v48 = vpop.permute.xlu1 %1834 }
 0x61c   :  { %v1837_v24 = vunpack.i.h.bf16 %v1835_v48  ;;  %v1836_v25 = vunpack.i.l.bf16 %v1835_v48 }
 0x61e   :  { %v1456_v37 = vsel %vm1454_vm5, %v1453_v31, %v1837_v24  ;;  %v1455_v38 = vsel %vm1454_vm5, %v1452_v35, %v1836_v25 }
 0x623   :  { %v1840_v26 = vpop.permute.xlu0 %1839 }
 0x624   :  { %v1842_v36 = vunpack.i.h.bf16 %v1840_v26  ;;  %v1841_v21 = vunpack.i.l.bf16 %v1840_v26 }
 0x626   :  { %v1459_v39 = vsel %vm1457_vm6, %v1456_v37, %v1842_v36  ;;  %v1458_v40 = vsel %vm1457_vm6, %v1455_v38, %v1841_v21 }
 0x627   :  { %v1460_v44 = vpack.c.bf16 %v1459_v39, %v1458_v40 }
 0x629   :  { %1801 = vmatmul.mubr.msk.bf16.vlgmr.msra.gmra.mrb[28].mxu0 %vm86_vm0, %v1460_v44 }
 0x6fc   :  { %v1525_v52 = vpop.f32.mrb[28].mxu0 }
 0x6fd   :  { %v1526_v55 = vadd.f32 %v1600_v49, %v1525_v52  ;;  %v1802_v32 = vpop.f32.mrb[29].mxu0 }
 0x6fe   :  { %v1528_v56 = vpop.f32.mrb[30].mxu0 }
 0x6ff   :  { %1532 = vst.msk [vmem:[#allocation2] sm:$0xff] %vm86_vm0, %v1526_v55  ;;  %v1529_v23 = vadd.f32 %v1600_v49, %v1528_v56  ;;  %v1803_v45 = vpop.f32.mrb[31].mxu0 }
 0x701   :  { %1533 = vst.msk [vmem:[#allocation2 + $0x8] sm:$0xff] %vm86_vm0, %v1529_v23 }
 0x702   :  { %1926 = shalt.err (!%p1923_p4)
}
 0x703   :  { %s1927_s24 = scalar_lea.hbm %s2441_s9, 256 }
 0x704   :  { %p1928_p5 = scmp.ne.s32.totalorder %s2441_s9, %s1927_s24  ;;  %p1931_p6 = scmp.lt.u32.totalorder %s1927_s24, %s2441_s9 }
 0x706   :  { %p1933_p7 = pnand %p1931_p6, %p1928_p5 }
 0x708   :  { %1936 = shalt.err (!%p1933_p7)
}
 0x709   :  { %s1950_s2 = smov 128  }
 0x70a   :  { %1545 = dma.vmem_to_hbm [thread:$0]  %s1540_s21, 256, %s2441_s9, [#allocation3], %s1950_s2, %s1950_s2, %s1946_s14  }
 0x70b   :  { %1937 = dma.done.wait [#allocation3], 256  }
 0x70c   :  { %1938 = vsyncadd [#allocation3], 4294967040 }
 0x70d   :  { %1549 = vsyncpa [#allocation3], 1 }

</bundles_post_ra>
